<compile_context>
chip_gen: v5e
topology: v5e:2x2
jax: 0.10.0
libtpu: 0.0.40
codegen_flags: <defaults>
</compile_context>

<pallas_src>
import functools

import jax
import jax.numpy as jnp
from jax.experimental import pallas as pl
from jax.experimental.pallas import tpu as pltpu


# ----------------------------- helpers ---------------------------------------
def _pick_tile(n: int, preferred) -> int:
    """Largest preferred tile that divides n; fall back to full extent."""
    for t in preferred:
        if t <= n and n % t == 0:
            return t
    return n


def _sigmoid(s):
    # sigmoid(x) == 0.5 * (tanh(x/2) + 1): one EUP op per element.
    return 0.5 * (jnp.tanh(0.5 * s) + 1.0)


# --------------------- fused dropout + inner-product + sigmoid ---------------
def _decode_kernel_resident(z_ref, m_ref, adj_ref, *, tm: int, tn: int):
    """One (tm, tn) tile of sigmoid((z*m) @ (z*m).T); z and m stay VMEM-resident."""
    r0 = pl.program_id(0) * tm
    c0 = pl.program_id(1) * tn
    zl = z_ref[pl.ds(r0, tm), :] * m_ref[pl.ds(r0, tm), :]
    zr = z_ref[pl.ds(c0, tn), :] * m_ref[pl.ds(c0, tn), :]
    # Contract last dims of both operands: no in-kernel transpose, default
    # MXU precision (bf16 product / f32 accumulate over K = D terms).
    s = jax.lax.dot_general(
        zl, zr, dimension_numbers=(((1,), (1,)), ((), ())),
        preferred_element_type=jnp.float32)
    adj_ref[...] = _sigmoid(s).astype(adj_ref.dtype)


def _decode_kernel_blocked(zl_ref, zr_ref, ml_ref, mr_ref, adj_ref):
    """Fallback when z is too large to keep fully resident in VMEM."""
    zl = zl_ref[...] * ml_ref[...]
    zr = zr_ref[...] * mr_ref[...]
    s = jax.lax.dot_general(
        zl, zr, dimension_numbers=(((1,), (1,)), ((), ())),
        preferred_element_type=jnp.float32)
    adj_ref[...] = _sigmoid(s).astype(adj_ref.dtype)


def inner_product_decoder(z: jax.Array,
                          dropout: float = 0.1,
                          seed: int = 0,
                          tm: int | None = None,
                          tn: int | None = None,
                          out_dtype=None) -> jax.Array:
    """Pallas implementation of InnerProductDecoder.forward (activation=sigmoid)."""
    N, D = z.shape
    out_dtype = z.dtype if out_dtype is None else out_dtype

    # Pad rows up to a multiple of 128 so every output tile is lane-dense and
    # every store is unmasked; slice the (N, N) result back out at the end.
    Np = ((N + 127) // 128) * 128
    z_p = z if Np == N else jnp.pad(z, ((0, Np - N), (0, 0)))

    # Shared dropout keep/scale mask (applied once, used for BOTH operands,
    # matching F.dropout followed by z @ z.T).
    p = float(dropout)
    if p <= 0.0:
        m_p = jnp.ones((Np, D), z.dtype)
    elif p >= 1.0:
        m_p = jnp.zeros((Np, D), z.dtype)          # F.dropout(p=1): all zeros
    else:
        keep = jax.random.bernoulli(jax.random.PRNGKey(seed), 1.0 - p, (Np, D))
        m_p = (keep.astype(jnp.float32) * (1.0 / (1.0 - p))).astype(z.dtype)

    # Lane-dense output tiles, ~4 MiB/step at the (512, 2048) f32 defaults.
    if tm is None:
        tm = _pick_tile(Np, (512, 256, 128, 64, 32, 16, 8))
    if tn is None:
        tn = _pick_tile(Np, (2048, 1024, 512, 256, 128))
    assert Np % tm == 0 and Np % tn == 0, "tile sizes must divide padded N"
    # Keep >= 2 blocks along a parallel axis so both v7x TensorCores get work.
    if (Np // tm) * (Np // tn) < 2 and tm >= 16 and Np % (tm // 2) == 0:
        tm //= 2
    grid = (Np // tm, Np // tn)

    esz = jnp.dtype(z.dtype).itemsize
    # z + mask resident (assume up to 2 buffers each) must stay well under VMEM.
    use_resident = (2 * 2 * Np * D * esz) <= (16 << 20)

    if use_resident:
        kernel = functools.partial(_decode_kernel_resident, tm=tm, tn=tn)
        in_specs = [
            pl.BlockSpec((Np, D), lambda i, j: (0, 0)),   # z: fetched once
            pl.BlockSpec((Np, D), lambda i, j: (0, 0)),   # mask: fetched once
        ]
        args = (z_p, m_p)
    else:
        kernel = _decode_kernel_blocked
        in_specs = [
            pl.BlockSpec((tm, D), lambda i, j: (i, 0)),
            pl.BlockSpec((tn, D), lambda i, j: (j, 0)),
            pl.BlockSpec((tm, D), lambda i, j: (i, 0)),
            pl.BlockSpec((tn, D), lambda i, j: (j, 0)),
        ]
        args = (z_p, z_p, m_p, m_p)

    adj_p = pl.pallas_call(
        kernel,
        out_shape=jax.ShapeDtypeStruct((Np, Np), out_dtype),
        grid_spec=pltpu.PrefetchScalarGridSpec(
            num_scalar_prefetch=0,
            grid=grid,
            in_specs=in_specs,
            out_specs=pl.BlockSpec((tm, tn), lambda i, j: (i, j)),
        ),
        compiler_params=pltpu.CompilerParams(
            dimension_semantics=("parallel", "parallel"),
            vmem_limit_bytes=48 << 20),
    )(*args)

    return adj_p if Np == N else adj_p[:N, :N]


# --------------------------------- main ---------------------------------------
if __name__ == "__main__":
    key = jax.random.PRNGKey(0)
    N, D = 256, 32                      # 256 nodes/cells, 32-dim latent embedding
    z = jax.random.normal(key, (N, D), dtype=jnp.float32)

    # Training-mode forward (dropout = 0.1).
    adj = inner_product_decoder(z, dropout=0.1, seed=123)
    jax.block_until_ready(adj)
    assert adj.shape == (N, N)
    assert bool(jnp.all(jnp.isfinite(adj)))
    assert bool(jnp.all((adj >= 0.0) & (adj <= 1.0)))

    # Dropout reference: reproduce the exact keep-mask the wrapper draws.
    keep = jax.random.bernoulli(jax.random.PRNGKey(123), 1.0 - 0.1, (N, D))
    m = keep.astype(jnp.float32) * (1.0 / (1.0 - 0.1))
    z_drop = z * m
    ref_drop = jax.nn.sigmoid(z_drop @ z_drop.T)
    assert bool(jnp.allclose(adj, ref_drop, atol=3e-2, rtol=3e-2))

    # Eval-mode (no dropout) must match sigmoid(z @ z.T).
    adj_eval = inner_product_decoder(z, dropout=0.0)
    ref = jax.nn.sigmoid(z @ z.T)
    jax.block_until_ready(adj_eval)
    assert bool(jnp.allclose(adj_eval, ref, atol=3e-2, rtol=3e-2))

    print("KERNEL_OK")
</pallas_src>

<mosaic_0001>
module attributes {stable_mosaic.version = 11 : i64} {
  func.func @_decode_kernel_resident(%arg0: i32, %arg1: i32, %arg2: memref<256x32xf32, #tpu.memory_space<vmem>>, %arg3: memref<256x32xf32, #tpu.memory_space<vmem>>, %arg4: memref<128x256xf32, #tpu.memory_space<vmem>>) attributes {dimension_semantics = [#tpu.dimension_semantics<parallel>, #tpu.dimension_semantics<parallel>], iteration_bounds = array<i64: 2, 1>, scalar_prefetch = 0 : i64, scratch_operands = 0 : i64, tpu.core_type = #tpu.core_type<tc>, window_params = [{pipeline_mode = #tpu.pipeline_mode<synchronous>, transform_indices = @transform_0, window_bounds = array<i64: 256, 32>}, {pipeline_mode = #tpu.pipeline_mode<synchronous>, transform_indices = @transform_1, window_bounds = array<i64: 256, 32>}, {transform_indices = @transform_2, window_bounds = array<i64: 128, 256>}]} {
    %c128_i32 = arith.constant 128 : i32
    %0 = arith.muli %arg0, %c128_i32 : i32
    %c256_i32 = arith.constant 256 : i32
    %1 = arith.muli %arg1, %c256_i32 : i32
    %2 = arith.index_cast %0 : i32 to index
    %c0 = arith.constant 0 : index
    %3 = vector.load %arg2[%2, %c0] : memref<256x32xf32, #tpu.memory_space<vmem>>, vector<128x32xf32>
    %4 = arith.index_cast %0 : i32 to index
    %c0_0 = arith.constant 0 : index
    %5 = vector.load %arg3[%4, %c0_0] : memref<256x32xf32, #tpu.memory_space<vmem>>, vector<128x32xf32>
    %6 = arith.mulf %3, %5 : vector<128x32xf32>
    %7 = arith.index_cast %1 : i32 to index
    %c0_1 = arith.constant 0 : index
    %8 = vector.load %arg2[%7, %c0_1] : memref<256x32xf32, #tpu.memory_space<vmem>>, vector<256x32xf32>
    %9 = arith.index_cast %1 : i32 to index
    %c0_2 = arith.constant 0 : index
    %10 = vector.load %arg3[%9, %c0_2] : memref<256x32xf32, #tpu.memory_space<vmem>>, vector<256x32xf32>
    %11 = arith.mulf %8, %10 : vector<256x32xf32>
    %cst = arith.constant dense<0.000000e+00> : vector<128x256xf32>
    %12 = tpu.matmul %6, %11, %cst {dimension_numbers = #tpu.dot_dimension_numbers<[1], [1], [0], [0], [0, 0, 1, 0], [], []>} : vector<128x32xf32>, vector<256x32xf32>, vector<128x256xf32> -> vector<128x256xf32>
    %cst_3 = arith.constant 5.000000e-01 : f32
    %13 = vector.broadcast %cst_3 : f32 to vector<128x256xf32>
    %14 = arith.mulf %13, %12 : vector<128x256xf32>
    %15 = math.tanh %14 : vector<128x256xf32>
    %cst_4 = arith.constant 1.000000e+00 : f32
    %16 = vector.broadcast %cst_4 : f32 to vector<128x256xf32>
    %17 = arith.addf %15, %16 : vector<128x256xf32>
    %cst_5 = arith.constant 5.000000e-01 : f32
    %18 = vector.broadcast %cst_5 : f32 to vector<128x256xf32>
    %19 = arith.mulf %18, %17 : vector<128x256xf32>
    %c0_6 = arith.constant 0 : index
    %c0_7 = arith.constant 0 : index
    %20 = vector.load %arg4[%c0_6, %c0_7] : memref<128x256xf32, #tpu.memory_space<vmem>>, vector<128x256xf32>
    tpu.vector_store %arg4[%c0_6, %c0_7], %19 {strides = array<i32>} : memref<128x256xf32, #tpu.memory_space<vmem>>, vector<128x256xf32>,
    return
  }
  func.func @transform_0(%arg0: i32, %arg1: i32) -> (i32, i32) {
    %c0_i32 = arith.constant 0 : i32
    %c0_i32_0 = arith.constant 0 : i32
    %c0_i32_1 = arith.constant 0 : i32
    return %c0_i32, %c0_i32_0 : i32, i32
  }
  func.func @transform_1(%arg0: i32, %arg1: i32) -> (i32, i32) {
    %c0_i32 = arith.constant 0 : i32
    %c0_i32_0 = arith.constant 0 : i32
    %c0_i32_1 = arith.constant 0 : i32
    return %c0_i32, %c0_i32_0 : i32, i32
  }
  func.func @transform_2(%arg0: i32, %arg1: i32) -> (i32, i32) {
    %c0_i32 = arith.constant 0 : i32
    return %arg0, %arg1 : i32, i32
  }
}

</mosaic_0001>

<bundles_post_ra>
// kernel: tpu_custom_call.1
= control target key start
LH: loop header
LB: loop body
LE: loop exit
PB: predicated region body
PF: predicated region fallthrough
CT: control target
= control target key end

     0   :  { %7 = vsyncpa [#allocation3], 0  ;;  %s1601_s0 = inlined_call_operand.vmem [shape: f32[256,32], index: 0, kind: input, shape index: {}]   ;;  %s1602_s1 = inlined_call_operand.vmem [shape: f32[256,32], index: 1, kind: input, shape index: {}]   ;;  %s1603_s2 = inlined_call_operand.hbm [shape: f32[256,256], index: 2, kind: output, shape index: {}]  }
   0x1   :  { %9 = vsyncpa [#allocation3 + $0x1], 0  ;;  %s1139_s9 = smov 0   ;;  %s1141_s10 = smov 0  }
   0x2   :  { %s1143_s11 = smov 0   ;;  %s1145_s12 = smov 0  }
   0x3   :  { %s1147_s13 = smov 0   ;;  %s1149_s14 = smov 0  }
   0x4 LB: > { %s811_s15 = sadd.s32 4294967295, %s1120_s14   ;;  %s812_s16 = sadd.s32 4294967294, %s1120_s14   ;;  %s1120_s14 = sphi %s1149_s14, %s15_s14   ;;  %s1116_s13 = sphi %s1147_s13, %s1610_s13   ;;  %s1112_s12 = sphi %s1145_s12, %s1609_s12   ;;  %s1108_s11 = sphi %s1143_s11, %s1608_s11   ;;  %s1104_s10 = sphi %s1141_s10, %s1607_s10   ;;  %s1100_s9 = sphi %s1139_s9, %s1606_s9  }
   0x5   : > { %s27_s17 = sadd.s32 1, %s1116_s13  ;;  %s78_s18 = sadd.s32 1, %s1108_s11 }
   0x6   : > { %p29_p0 = scmp.ge.s32.totalorder %s27_s17, 2  ;;  %p88_p1 = scmp.ne.s32.totalorder %s1108_s11, %s1104_s10 }
   0x7   : > { %p89_p2 = scmp.eq.s32.totalorder %s811_s15, 1  ;;  %p94_p3 = scmp.ne.s32.totalorder %s1104_s10, %s1100_s9 }
   0x8   : > { %s1612_s17 = smov (%p29_p0, %s27_s17), 0  ;;  %p95_p5 = scmp.eq.s32.totalorder %s812_s16, 1 }
   0x9   : > { %p1179_p4 = por %p89_p2, %p88_p1  ;;  %s73_s20 = ssub.s32 %s1116_s13, %s1612_s17 }
   0xa   : > { %p814_p6 = scmp.ge.s32.totalorder %s1120_s14, 1  ;;  %p76_p7 = scmp.eq.s32.totalorder %s73_s20, 0 }
   0xb   : > { %p1186_p8 = por %p95_p5, %p94_p3  ;;  %p119_p9 = scmp.lt.s32.totalorder %s1120_s14, 3 }
   0xc   : > { %s1192_s22 = scalar_select %p76_p7, %s1108_s11, %s78_s18  }
   0xd   : > { %p120_p10 = pnand %p814_p6, %p119_p9 }
   0xe   : > { %s816_s3 = sshll.u32 (!%p120_p10), %s1112_s12, 7  ;;  %s888_s7 = sshll.u32 (!%p120_p10), %s1112_s12, 8 }
   0xf   : > { %123 = sbr.rel (%p120_p10) target bundleno = 294 (0x126), region = 28  ;;  %s1432_s16 = scalar_lea.vmem (!%p120_p10), %s1601_s0, %s816_s3 }
  0x10   : > { %s1445_s27 = scalar_lea.vmem (!%p120_p10), %s1602_s1, %s816_s3  ;;  %s133_s3 = sand.u32 (!%p120_p10), 1, %s1104_s10  }
  0x11   : > { %s815_s5 = sshll.u32 (!%p120_p10), %s133_s3, 8  ;;  %s724_s20 = scalar_lea.sflag (!%p120_p10), [#allocation3], %s133_s3 }
  0x12   : > { %s1528_s6 = scalar_lea.vmem (!%p120_p10), [#allocation2], %s815_s5 }
  0x13   : > { %s739_s12 = sshll.u32 (!%p120_p10), %s1528_s6, 4  ;;  %s740_s12 = int_to_ptr.vmem [resolvable:$true] %s739_s12 }
  0x14   : > { %v206_v0 = vld [vmem:[%s1601_s0 + $0x78] sm:$0xff]  ;;  %vm288_vm0 = vcmask 261120   ;;  %v205_v5 = vld [vmem:[%s1601_s0 + $0x70] sm:$0xff]  ;;  %v204_v12 = vld [vmem:[%s1601_s0 + $0x68] sm:$0xff] }
  0x15   : > { %v239_v1 = vld [vmem:[%s1602_s1 + $0x78] sm:$0xff]  ;;  %v238_v6 = vld [vmem:[%s1602_s1 + $0x70] sm:$0xff]  ;;  %v237_v13 = vld [vmem:[%s1602_s1 + $0x68] sm:$0xff] }
  0x16   : > { %v222_v2 = vld [vmem:[%s1601_s0 + $0xf8] sm:$0xff]  ;;  %v271_v3 = vmul.f32 %v239_v1, %v206_v0  ;;  %v221_v8 = vld [vmem:[%s1601_s0 + $0xf0] sm:$0xff]  ;;  %v270_v10 = vmul.f32 %v238_v6, %v205_v5  ;;  %v220_v14 = vld [vmem:[%s1601_s0 + $0xe8] sm:$0xff]  ;;  %v269_v16 = vmul.f32 %v237_v13, %v204_v12 }
  0x17   : > { %v255_v4 = vld [vmem:[%s1602_s1 + $0xf8] sm:$0xff]  ;;  %v254_v9 = vld [vmem:[%s1602_s1 + $0xf0] sm:$0xff]  ;;  %v253_v15 = vld [vmem:[%s1602_s1 + $0xe8] sm:$0xff] }
  0x18   : > { %v287_v7 = vmul.f32 %v255_v4, %v222_v2  ;;  %889 = vmatpush.xpose.msk.msra.mxu2 %vm288_vm0, %v271_v3  ;;  %817 = vmatpush.xpose.msk.msra.mxu0 %vm288_vm0, %v271_v3  ;;  %v286_v11 = vmul.f32 %v254_v9, %v221_v8  ;;  %v285_v17 = vmul.f32 %v253_v15, %v220_v14  ;;  %v203_v18 = vld [vmem:[%s1601_s0 + $0x60] sm:$0xff]  ;;  %v202_v24 = vld [vmem:[%s1601_s0 + $0x58] sm:$0xff]  ;;  %v201_v30 = vld [vmem:[%s1601_s0 + $0x50] sm:$0xff] }
  0x19   : > { %v236_v19 = vld [vmem:[%s1602_s1 + $0x60] sm:$0xff]  ;;  %v235_v25 = vld [vmem:[%s1602_s1 + $0x58] sm:$0xff]  ;;  %v234_v31 = vld [vmem:[%s1602_s1 + $0x50] sm:$0xff] }
  0x1a   : > { %905 = vmatpush.xpose.msk.msra.mxu3 %vm288_vm0, %v287_v7  ;;  %849 = vmatpush.xpose.msk.msra.mxu1 %vm288_vm0, %v287_v7  ;;  %v219_v20 = vld [vmem:[%s1601_s0 + $0xe0] sm:$0xff]  ;;  %v268_v22 = vmul.f32 %v236_v19, %v203_v18  ;;  %v218_v26 = vld [vmem:[%s1601_s0 + $0xd8] sm:$0xff]  ;;  %v267_v28 = vmul.f32 %v235_v25, %v202_v24  ;;  %v217_v32 = vld [vmem:[%s1601_s0 + $0xd0] sm:$0xff]  ;;  %v266_v34 = vmul.f32 %v234_v31, %v201_v30 }
  0x1b   : > { %v252_v21 = vld [vmem:[%s1602_s1 + $0xe0] sm:$0xff]  ;;  %v251_v27 = vld [vmem:[%s1602_s1 + $0xd8] sm:$0xff]  ;;  %v250_v33 = vld [vmem:[%s1602_s1 + $0xd0] sm:$0xff] }
  0x1c   : > { %890 = vmatpush.xpose.msk.msra.mxu2 %vm288_vm0, %v270_v10  ;;  %818 = vmatpush.xpose.msk.msra.mxu0 %vm288_vm0, %v270_v10  ;;  %v284_v23 = vmul.f32 %v252_v21, %v219_v20  ;;  %v283_v29 = vmul.f32 %v251_v27, %v218_v26  ;;  %v282_v35 = vmul.f32 %v250_v33, %v217_v32  ;;  %v200_v36 = vld [vmem:[%s1601_s0 + $0x48] sm:$0xff]  ;;  %v199_v42 = vld [vmem:[%s1601_s0 + $0x40] sm:$0xff]  ;;  %v198_v48 = vld [vmem:[%s1601_s0 + $0x38] sm:$0xff] }
  0x1d   : > { %v233_v37 = vld [vmem:[%s1602_s1 + $0x48] sm:$0xff]  ;;  %v232_v43 = vld [vmem:[%s1602_s1 + $0x40] sm:$0xff]  ;;  %v231_v49 = vld [vmem:[%s1602_s1 + $0x38] sm:$0xff] }
  0x1e   : > { %906 = vmatpush.xpose.msk.msra.mxu3 %vm288_vm0, %v286_v11  ;;  %850 = vmatpush.xpose.msk.msra.mxu1 %vm288_vm0, %v286_v11  ;;  %v216_v38 = vld [vmem:[%s1601_s0 + $0xc8] sm:$0xff]  ;;  %v265_v40 = vmul.f32 %v233_v37, %v200_v36  ;;  %v215_v44 = vld [vmem:[%s1601_s0 + $0xc0] sm:$0xff]  ;;  %v264_v46 = vmul.f32 %v232_v43, %v199_v42  ;;  %v214_v50 = vld [vmem:[%s1601_s0 + $0xb8] sm:$0xff]  ;;  %v263_v52 = vmul.f32 %v231_v49, %v198_v48 }
  0x1f   : > { %v249_v39 = vld [vmem:[%s1602_s1 + $0xc8] sm:$0xff]  ;;  %v248_v45 = vld [vmem:[%s1602_s1 + $0xc0] sm:$0xff]  ;;  %v247_v51 = vld [vmem:[%s1602_s1 + $0xb8] sm:$0xff] }
  0x20   : > { %891 = vmatpush.xpose.msk.msra.mxu2 %vm288_vm0, %v269_v16  ;;  %819 = vmatpush.xpose.msk.msra.mxu0 %vm288_vm0, %v269_v16  ;;  %v281_v41 = vmul.f32 %v249_v39, %v216_v38  ;;  %v280_v47 = vmul.f32 %v248_v45, %v215_v44  ;;  %v279_v53 = vmul.f32 %v247_v51, %v214_v50  ;;  %v197_v54 = vld [vmem:[%s1601_s0 + $0x30] sm:$0xff]  ;;  %v196_v60 = vld [vmem:[%s1601_s0 + $0x28] sm:$0xff]  ;;  %v195_v2 = vld [vmem:[%s1601_s0 + $0x20] sm:$0xff] }
  0x21   : > { %v230_v55 = vld [vmem:[%s1602_s1 + $0x30] sm:$0xff]  ;;  %v229_v61 = vld [vmem:[%s1602_s1 + $0x28] sm:$0xff]  ;;  %v228_v3 = vld [vmem:[%s1602_s1 + $0x20] sm:$0xff] }
  0x22   : > { %907 = vmatpush.xpose.msk.msra.mxu3 %vm288_vm0, %v285_v17  ;;  %851 = vmatpush.xpose.msk.msra.mxu1 %vm288_vm0, %v285_v17  ;;  %v213_v56 = vld [vmem:[%s1601_s0 + $0xb0] sm:$0xff]  ;;  %v262_v58 = vmul.f32 %v230_v55, %v197_v54  ;;  %v212_v62 = vld [vmem:[%s1601_s0 + $0xa8] sm:$0xff]  ;;  %v261_v0 = vmul.f32 %v229_v61, %v196_v60  ;;  %v211_v4 = vld [vmem:[%s1601_s0 + $0xa0] sm:$0xff]  ;;  %v260_v6 = vmul.f32 %v228_v3, %v195_v2 }
  0x23   : > { %v246_v57 = vld [vmem:[%s1602_s1 + $0xb0] sm:$0xff]  ;;  %v245_v63 = vld [vmem:[%s1602_s1 + $0xa8] sm:$0xff]  ;;  %v244_v5 = vld [vmem:[%s1602_s1 + $0xa0] sm:$0xff] }
  0x24   : > { %892 = vmatpush.xpose.msk.msra.mxu2 %vm288_vm0, %v268_v22  ;;  %820 = vmatpush.xpose.msk.msra.mxu0 %vm288_vm0, %v268_v22  ;;  %v278_v59 = vmul.f32 %v246_v57, %v213_v56  ;;  %v277_v1 = vmul.f32 %v245_v63, %v212_v62  ;;  %v276_v7 = vmul.f32 %v244_v5, %v211_v4  ;;  %v194_v8 = vld [vmem:[%s1601_s0 + $0x18] sm:$0xff]  ;;  %v193_v14 = vld [vmem:[%s1601_s0 + $0x10] sm:$0xff]  ;;  %v192_v20 = vld [vmem:[%s1601_s0 + $0x8] sm:$0xff] }
  0x25   : > { %v227_v9 = vld [vmem:[%s1602_s1 + $0x18] sm:$0xff]  ;;  %v226_v15 = vld [vmem:[%s1602_s1 + $0x10] sm:$0xff]  ;;  %v225_v21 = vld [vmem:[%s1602_s1 + $0x8] sm:$0xff] }
  0x26   : > { %908 = vmatpush.xpose.msk.msra.mxu3 %vm288_vm0, %v284_v23  ;;  %852 = vmatpush.xpose.msk.msra.mxu1 %vm288_vm0, %v284_v23  ;;  %v210_v10 = vld [vmem:[%s1601_s0 + $0x98] sm:$0xff]  ;;  %v259_v12 = vmul.f32 %v227_v9, %v194_v8  ;;  %v209_v16 = vld [vmem:[%s1601_s0 + $0x90] sm:$0xff]  ;;  %v258_v18 = vmul.f32 %v226_v15, %v193_v14  ;;  %v208_v22 = vld [vmem:[%s1601_s0 + $0x88] sm:$0xff]  ;;  %v257_v24 = vmul.f32 %v225_v21, %v192_v20 }
  0x27   : > { %v243_v11 = vld [vmem:[%s1602_s1 + $0x98] sm:$0xff]  ;;  %v242_v17 = vld [vmem:[%s1602_s1 + $0x90] sm:$0xff]  ;;  %v241_v23 = vld [vmem:[%s1602_s1 + $0x88] sm:$0xff] }
  0x28   : > { %893 = vmatpush.xpose.msk.msra.mxu2 %vm288_vm0, %v267_v28  ;;  %821 = vmatpush.xpose.msk.msra.mxu0 %vm288_vm0, %v267_v28  ;;  %v275_v13 = vmul.f32 %v243_v11, %v210_v10  ;;  %v274_v19 = vmul.f32 %v242_v17, %v209_v16  ;;  %v273_v25 = vmul.f32 %v241_v23, %v208_v22  ;;  %v191_v26 = vld [vmem:[%s1601_s0] sm:$0xff]  ;;  %v150_v38 = vld [vmem:[%s1432_s16 + $0x48] sm:$0xff]  ;;  %v151_v44 = vld [vmem:[%s1432_s16 + $0x50] sm:$0xff] }
  0x29   : > { %v224_v27 = vld [vmem:[%s1602_s1] sm:$0xff]  ;;  %v167_v39 = vld [vmem:[%s1445_s27 + $0x48] sm:$0xff]  ;;  %v168_v45 = vld [vmem:[%s1445_s27 + $0x50] sm:$0xff] }
  0x2a   : > { %909 = vmatpush.xpose.msk.msra.mxu3 %vm288_vm0, %v283_v29  ;;  %853 = vmatpush.xpose.msk.msra.mxu1 %vm288_vm0, %v283_v29  ;;  %v207_v28 = vld [vmem:[%s1601_s0 + $0x80] sm:$0xff]  ;;  %v256_v31 = vmul.f32 %v224_v27, %v191_v26  ;;  %v183_v42 = vmul.f32 %v167_v39, %v150_v38  ;;  %v184_v48 = vmul.f32 %v168_v45, %v151_v44  ;;  %v152_v50 = vld [vmem:[%s1432_s16 + $0x58] sm:$0xff]  ;;  %v154_v62 = vld [vmem:[%s1432_s16 + $0x68] sm:$0xff] }
  0x2b   : > { %v240_v29 = vld [vmem:[%s1602_s1 + $0x80] sm:$0xff]  ;;  %v169_v51 = vld [vmem:[%s1445_s27 + $0x58] sm:$0xff]  ;;  %v171_v63 = vld [vmem:[%s1445_s27 + $0x68] sm:$0xff] }
  0x2c   : > { %894 = vmatpush.xpose.msk.msra.mxu2 %vm288_vm0, %v266_v34  ;;  %822 = vmatpush.xpose.msk.msra.mxu0 %vm288_vm0, %v266_v34  ;;  %v149_v30 = vld [vmem:[%s1432_s16 + $0x40] sm:$0xff]  ;;  %v185_v54 = vmul.f32 %v169_v51, %v152_v50  ;;  %v187_v2 = vmul.f32 %v171_v63, %v154_v62  ;;  %v155_v4 = vld [vmem:[%s1432_s16 + $0x70] sm:$0xff]  ;;  %v156_v10 = vld [vmem:[%s1432_s16 + $0x78] sm:$0xff] }
  0x2d   : > { %v166_v32 = vld [vmem:[%s1445_s27 + $0x40] sm:$0xff]  ;;  %v172_v5 = vld [vmem:[%s1445_s27 + $0x70] sm:$0xff]  ;;  %v173_v11 = vld [vmem:[%s1445_s27 + $0x78] sm:$0xff] }
  0x2e   : > { %910 = vmatpush.xpose.msk.msra.mxu3 %vm288_vm0, %v282_v35  ;;  %854 = vmatpush.xpose.msk.msra.mxu1 %vm288_vm0, %v282_v35  ;;  %v141_v33 = vld [vmem:[%s1432_s16] sm:$0xff]  ;;  %v272_v35 = vmul.f32 %v240_v29, %v207_v28  ;;  %v182_v36 = vmul.f32 %v166_v32, %v149_v30  ;;  %v188_v8 = vmul.f32 %v172_v5, %v155_v4 }
  0x2f   : > { %v158_v34 = vld [vmem:[%s1445_s27] sm:$0xff]  ;;  %v189_v14 = vmul.f32 %v173_v11, %v156_v10 }
  0x30   : > { %895 = vmatpush.xpose.msk.msra.mxu2 %vm288_vm0, %v265_v40  ;;  %823 = vmatpush.xpose.msk.msra.mxu0 %vm288_vm0, %v265_v40  ;;  %v174_v37 = vmul.f32 %v158_v34, %v141_v33  ;;  %v142_v40 = vld [vmem:[%s1432_s16 + $0x8] sm:$0xff]  ;;  %v153_v56 = vld [vmem:[%s1432_s16 + $0x60] sm:$0xff] }
  0x31   : > { %v170_v57 = vld [vmem:[%s1445_s27 + $0x60] sm:$0xff] }
  0x32   : > { %911 = vmatpush.xpose.msk.msra.mxu3 %vm288_vm0, %v281_v41  ;;  %855 = vmatpush.xpose.msk.msra.mxu1 %vm288_vm0, %v281_v41  ;;  %v159_v41 = vld [vmem:[%s1445_s27 + $0x8] sm:$0xff]  ;;  %v186_v60 = vmul.f32 %v170_v57, %v153_v56 }
  0x33   : > { %v175_v43 = vmul.f32 %v159_v41, %v142_v40 }
  0x34   : > { %896 = vmatpush.xpose.msk.msra.mxu2 %vm288_vm0, %v264_v46  ;;  %824 = vmatpush.xpose.msk.msra.mxu0 %vm288_vm0, %v264_v46  ;;  %v143_v46 = vld [vmem:[%s1432_s16 + $0x10] sm:$0xff] }
  0x36   : > { %912 = vmatpush.xpose.msk.msra.mxu3 %vm288_vm0, %v280_v47  ;;  %856 = vmatpush.xpose.msk.msra.mxu1 %vm288_vm0, %v280_v47  ;;  %v160_v47 = vld [vmem:[%s1445_s27 + $0x10] sm:$0xff] }
  0x37   : > { %v176_v49 = vmul.f32 %v160_v47, %v143_v46 }
  0x38   : > { %897 = vmatpush.xpose.msk.msra.mxu2 %vm288_vm0, %v263_v52  ;;  %825 = vmatpush.xpose.msk.msra.mxu0 %vm288_vm0, %v263_v52  ;;  %v144_v52 = vld [vmem:[%s1432_s16 + $0x18] sm:$0xff] }
  0x3a   : > { %913 = vmatpush.xpose.msk.msra.mxu3 %vm288_vm0, %v279_v53  ;;  %857 = vmatpush.xpose.msk.msra.mxu1 %vm288_vm0, %v279_v53  ;;  %v161_v53 = vld [vmem:[%s1445_s27 + $0x18] sm:$0xff] }
  0x3b   : > { %v177_v55 = vmul.f32 %v161_v53, %v144_v52 }
  0x3c   : > { %898 = vmatpush.xpose.msk.msra.mxu2 %vm288_vm0, %v262_v58  ;;  %826 = vmatpush.xpose.msk.msra.mxu0 %vm288_vm0, %v262_v58  ;;  %v145_v58 = vld [vmem:[%s1432_s16 + $0x20] sm:$0xff] }
  0x3e   : > { %914 = vmatpush.xpose.msk.msra.mxu3 %vm288_vm0, %v278_v59  ;;  %858 = vmatpush.xpose.msk.msra.mxu1 %vm288_vm0, %v278_v59  ;;  %v162_v59 = vld [vmem:[%s1445_s27 + $0x20] sm:$0xff] }
  0x3f   : > { %v178_v61 = vmul.f32 %v162_v59, %v145_v58 }
  0x40   : > { %899 = vmatpush.xpose.msk.msra.mxu2 %vm288_vm0, %v261_v0  ;;  %827 = vmatpush.xpose.msk.msra.mxu0 %vm288_vm0, %v261_v0  ;;  %v146_v0 = vld [vmem:[%s1432_s16 + $0x28] sm:$0xff] }
  0x42   : > { %915 = vmatpush.xpose.msk.msra.mxu3 %vm288_vm0, %v277_v1  ;;  %859 = vmatpush.xpose.msk.msra.mxu1 %vm288_vm0, %v277_v1  ;;  %v163_v1 = vld [vmem:[%s1445_s27 + $0x28] sm:$0xff] }
  0x43   : > { %v179_v3 = vmul.f32 %v163_v1, %v146_v0 }
  0x44   : > { %900 = vmatpush.xpose.msk.msra.mxu2 %vm288_vm0, %v260_v6  ;;  %828 = vmatpush.xpose.msk.msra.mxu0 %vm288_vm0, %v260_v6  ;;  %v147_v6 = vld [vmem:[%s1432_s16 + $0x30] sm:$0xff] }
  0x46   : > { %916 = vmatpush.xpose.msk.msra.mxu3 %vm288_vm0, %v276_v7  ;;  %860 = vmatpush.xpose.msk.msra.mxu1 %vm288_vm0, %v276_v7  ;;  %v164_v7 = vld [vmem:[%s1445_s27 + $0x30] sm:$0xff] }
  0x47   : > { %v180_v9 = vmul.f32 %v164_v7, %v147_v6 }
  0x48   : > { %901 = vmatpush.xpose.msk.msra.mxu2 %vm288_vm0, %v259_v12  ;;  %829 = vmatpush.xpose.msk.msra.mxu0 %vm288_vm0, %v259_v12  ;;  %v148_v12 = vld [vmem:[%s1432_s16 + $0x38] sm:$0xff]  ;;  %s738_s16 = scalar_lea.hbm %s1603_s2, %s888_s7 }
  0x49   : > { %s741_s18 = sshll.u32 %s738_s16, 4  ;;  %s742_s18 = int_to_ptr.hbm [resolvable:$true] %s741_s18 }
  0x4a   : > { %917 = vmatpush.xpose.msk.msra.mxu3 %vm288_vm0, %v275_v13  ;;  %861 = vmatpush.xpose.msk.msra.mxu1 %vm288_vm0, %v275_v13  ;;  %v165_v13 = vld [vmem:[%s1445_s27 + $0x38] sm:$0xff]  ;;  %s1056_s23 = sshra.s32 %s742_s18, 4  ;;  %s1062_s27 = scalar_lea.hbm %s1603_s2, 512  ;;  %s1057_s23 = int_to_ptr.hbm [resolvable:$true] %s1056_s23 }
  0x4b   : > { %v181_v15 = vmul.f32 %v165_v13, %v148_v12  ;;  %s1058_s24 = scalar_lea.hbm %s1057_s23, 256  ;;  %p1063_p0 = scmp.lt.s32.totalorder %s1057_s23, %s1603_s2 }
  0x4c   : > { %902 = vmatpush.xpose.msk.msra.mxu2 %vm288_vm0, %v258_v18  ;;  %830 = vmatpush.xpose.msk.msra.mxu0 %vm288_vm0, %v258_v18  ;;  %p1059_p11 = scmp.ne.s32.totalorder %s1057_s23, %s1058_s24  ;;  %p1064_p1 = scmp.lt.s32.totalorder %s1062_s27, %s1058_s24 }
  0x4e   : > { %918 = vmatpush.xpose.msk.msra.mxu3 %vm288_vm0, %v274_v19  ;;  %862 = vmatpush.xpose.msk.msra.mxu1 %vm288_vm0, %v274_v19  ;;  %p1060_p12 = pnand %p1059_p11, %p1179_p4  ;;  %p1065_p2 = por %p1064_p1, %p1063_p0 }
  0x50   : > { %903 = vmatpush.xpose.msk.msra.mxu2 %vm288_vm0, %v257_v24  ;;  %831 = vmatpush.xpose.msk.msra.mxu0 %vm288_vm0, %v257_v24  ;;  %p1061_p13 = pneg %p1060_p12 }
  0x52   : > { %919 = vmatpush.xpose.msk.msra.mxu3 %vm288_vm0, %v273_v25  ;;  %863 = vmatpush.xpose.msk.msra.mxu1 %vm288_vm0, %v273_v25  ;;  %p1066_p3 = pnand %p1065_p2, %p1061_p13 }
  0x54   : > { %904 = vmatpush.xpose.msk.msra.mxu2 %vm288_vm0, %v256_v31  ;;  %832 = vmatpush.xpose.msk.msra.mxu0 %vm288_vm0, %v256_v31 }
  0x56   : > { %920 = vmatpush.xpose.msk.msra.mxu3 %vm288_vm0, %v272_v35  ;;  %864 = vmatpush.xpose.msk.msra.mxu1 %vm288_vm0, %v272_v35 }
  0x57   : > { %841 = vmatmul.msk.f32.vlgmr.msra.gmra.mxu2 %vm288_vm0, %v182_v36  ;;  %833 = vmatmul.msk.f32.vlgmr.msra.gmra.mxu0 %vm288_vm0, %v174_v37 }
  0x59   : > { %873 = vmatmul.msk.f32.vlgmr.msra.gmra.mxu3 %vm288_vm0, %v182_v36  ;;  %865 = vmatmul.msk.f32.vlgmr.msra.gmra.mxu1 %vm288_vm0, %v174_v37 }
  0x5f   : > { %842 = vmatmul.msk.f32.gmra.mxu2 %vm288_vm0, %v183_v42  ;;  %834 = vmatmul.msk.f32.gmra.mxu0 %vm288_vm0, %v175_v43 }
  0x61   : > { %874 = vmatmul.msk.f32.gmra.mxu3 %vm288_vm0, %v183_v42  ;;  %866 = vmatmul.msk.f32.gmra.mxu1 %vm288_vm0, %v175_v43 }
  0x67   : > { %843 = vmatmul.msk.f32.gmra.mxu2 %vm288_vm0, %v184_v48  ;;  %835 = vmatmul.msk.f32.gmra.mxu0 %vm288_vm0, %v176_v49 }
  0x69   : > { %875 = vmatmul.msk.f32.gmra.mxu3 %vm288_vm0, %v184_v48  ;;  %867 = vmatmul.msk.f32.gmra.mxu1 %vm288_vm0, %v176_v49 }
  0x6f   : > { %844 = vmatmul.msk.f32.gmra.mxu2 %vm288_vm0, %v185_v54  ;;  %836 = vmatmul.msk.f32.gmra.mxu0 %vm288_vm0, %v177_v55 }
  0x71   : > { %876 = vmatmul.msk.f32.gmra.mxu3 %vm288_vm0, %v185_v54  ;;  %868 = vmatmul.msk.f32.gmra.mxu1 %vm288_vm0, %v177_v55 }
  0x77   : > { %845 = vmatmul.msk.f32.gmra.mxu2 %vm288_vm0, %v186_v60  ;;  %837 = vmatmul.msk.f32.gmra.mxu0 %vm288_vm0, %v178_v61 }
  0x79   : > { %877 = vmatmul.msk.f32.gmra.mxu3 %vm288_vm0, %v186_v60  ;;  %869 = vmatmul.msk.f32.gmra.mxu1 %vm288_vm0, %v178_v61 }
  0x7f   : > { %846 = vmatmul.msk.f32.gmra.mxu2 %vm288_vm0, %v187_v2  ;;  %838 = vmatmul.msk.f32.gmra.mxu0 %vm288_vm0, %v179_v3 }
  0x81   : > { %878 = vmatmul.msk.f32.gmra.mxu3 %vm288_vm0, %v187_v2  ;;  %870 = vmatmul.msk.f32.gmra.mxu1 %vm288_vm0, %v179_v3 }
  0x87   : > { %847 = vmatmul.msk.f32.gmra.mxu2 %vm288_vm0, %v188_v8  ;;  %839 = vmatmul.msk.f32.gmra.mxu0 %vm288_vm0, %v180_v9 }
  0x89   : > { %879 = vmatmul.msk.f32.gmra.mxu3 %vm288_vm0, %v188_v8  ;;  %871 = vmatmul.msk.f32.gmra.mxu1 %vm288_vm0, %v180_v9 }
  0x8f   : > { %848 = vmatmul.msk.f32.gmra.mxu2 %vm288_vm0, %v189_v14  ;;  %840 = vmatmul.msk.f32.gmra.mxu0 %vm288_vm0, %v181_v15 }
  0x91   : > { %880 = vmatmul.msk.f32.gmra.mxu3 %vm288_vm0, %v189_v14  ;;  %872 = vmatmul.msk.f32.gmra.mxu1 %vm288_vm0, %v181_v15 }
  0xd4   : > { %v450_v16 = vpop.f32.mrf.mxu0 }
  0xd5   : > { %v563_v17 = vmul.f32 0.5, %v450_v16 }
  0xd6   : > { %v515_v18 = vpop.f32.mrf.mxu1 }
  0xd7   : > { %v564_v19 = vmul.f32 0.5, %v515_v18  ;;  %978 = vtanh.f32 %v563_v17 }
  0xd9   : > { %980 = vtanh.f32 %v564_v19 }
  0xda   : > { %v474_v20 = vpop.f32.mrf.mxu2 }
  0xdb   : > { %v579_v21 = vmul.f32 0.5, %v474_v20 }
  0xdc   : > { %v539_v22 = vpop.f32.mrf.mxu3  ;;  %v453_v24 = vpop.f32.mrf.mxu0 }
  0xdd   : > { %v580_v23 = vmul.f32 0.5, %v539_v22  ;;  %v979_v25 = vpop.eup %978  ;;  %982 = vtanh.f32 %v579_v21  ;;  %v565_v26 = vmul.f32 0.5, %v453_v24 }
  0xde   : > { %v518_v27 = vpop.f32.mrf.mxu1  ;;  %v627_v29 = vadd.f32 1.0, %v979_v25 }
  0xdf   : > { %v981_v28 = vpop.eup %980  ;;  %984 = vtanh.f32 %v580_v23  ;;  %v566_v30 = vmul.f32 0.5, %v518_v27 }
  0xe0   : > { %v628_v31 = vadd.f32 1.0, %v981_v28  ;;  %986 = vtanh.f32 %v565_v26  ;;  %v659_v32 = vmul.f32 0.5, %v627_v29 }
  0xe1   : > { %988 = vtanh.f32 %v566_v30 }
  0xe2   : > { %v660_v33 = vmul.f32 0.5, %v628_v31  ;;  %691 = vst [vmem:[%s1528_s6] sm:$0xff] %v659_v32  ;;  %v477_v34 = vpop.f32.mrf.mxu2 }
  0xe3   : > { %v983_v35 = vpop.eup %982  ;;  %v581_v36 = vmul.f32 0.5, %v477_v34 }
  0xe4   : > { %692 = vst [vmem:[%s1528_s6 + $0x8] sm:$0xff] %v660_v33  ;;  %v542_v37 = vpop.f32.mrf.mxu3  ;;  %v643_v39 = vadd.f32 1.0, %v983_v35  ;;  %v456_v41 = vpop.f32.mrf.mxu0 }
  0xe5   : > { %v985_v38 = vpop.eup %984  ;;  %v582_v40 = vmul.f32 0.5, %v542_v37  ;;  %990 = vtanh.f32 %v581_v36  ;;  %v567_v44 = vmul.f32 0.5, %v456_v41 }
  0xe6   : > { %v987_v42 = vpop.eup %986  ;;  %v644_v43 = vadd.f32 1.0, %v985_v38  ;;  %v521_v45 = vpop.f32.mrf.mxu1  ;;  %v675_v47 = vmul.f32 0.5, %v643_v39 }
  0xe7   : > { %v989_v46 = vpop.eup %988  ;;  %v629_v48 = vadd.f32 1.0, %v987_v42  ;;  %992 = vtanh.f32 %v582_v40  ;;  %v568_v49 = vmul.f32 0.5, %v521_v45 }
  0xe8   : > { %v676_v50 = vmul.f32 0.5, %v644_v43  ;;  %v630_v51 = vadd.f32 1.0, %v989_v46  ;;  %994 = vtanh.f32 %v567_v44  ;;  %707 = vst [vmem:[%s1528_s6 + $0x80] sm:$0xff] %v675_v47 }
  0xe9   : > { %v661_v52 = vmul.f32 0.5, %v629_v48  ;;  %996 = vtanh.f32 %v568_v49 }
  0xea   : > { %708 = vst [vmem:[%s1528_s6 + $0x88] sm:$0xff] %v676_v50  ;;  %v662_v53 = vmul.f32 0.5, %v630_v51  ;;  %v480_v54 = vpop.f32.mrf.mxu2 }
  0xeb   : > { %693 = vst [vmem:[%s1528_s6 + $0x10] sm:$0xff] %v661_v52  ;;  %v991_v55 = vpop.eup %990  ;;  %v583_v56 = vmul.f32 0.5, %v480_v54 }
  0xec   : > { %694 = vst [vmem:[%s1528_s6 + $0x18] sm:$0xff] %v662_v53  ;;  %v545_v57 = vpop.f32.mrf.mxu3  ;;  %v645_v59 = vadd.f32 1.0, %v991_v55  ;;  %v459_v61 = vpop.f32.mrf.mxu0 }
  0xed   : > { %v993_v58 = vpop.eup %992  ;;  %v584_v60 = vmul.f32 0.5, %v545_v57  ;;  %998 = vtanh.f32 %v583_v56  ;;  %v569_v0 = vmul.f32 0.5, %v459_v61 }
  0xee   : > { %v995_v62 = vpop.eup %994  ;;  %v646_v63 = vadd.f32 1.0, %v993_v58  ;;  %v524_v1 = vpop.f32.mrf.mxu1  ;;  %v677_v3 = vmul.f32 0.5, %v645_v59 }
  0xef   : > { %v997_v2 = vpop.eup %996  ;;  %v631_v4 = vadd.f32 1.0, %v995_v62  ;;  %1000 = vtanh.f32 %v584_v60  ;;  %v570_v5 = vmul.f32 0.5, %v524_v1 }
  0xf0   : > { %v678_v6 = vmul.f32 0.5, %v646_v63  ;;  %v632_v7 = vadd.f32 1.0, %v997_v2  ;;  %1002 = vtanh.f32 %v569_v0  ;;  %709 = vst [vmem:[%s1528_s6 + $0x90] sm:$0xff] %v677_v3 }
  0xf1   : > { %v663_v8 = vmul.f32 0.5, %v631_v4  ;;  %1004 = vtanh.f32 %v570_v5 }
  0xf2   : > { %710 = vst [vmem:[%s1528_s6 + $0x98] sm:$0xff] %v678_v6  ;;  %v664_v9 = vmul.f32 0.5, %v632_v7  ;;  %v483_v10 = vpop.f32.mrf.mxu2 }
  0xf3   : > { %695 = vst [vmem:[%s1528_s6 + $0x20] sm:$0xff] %v663_v8  ;;  %v999_v11 = vpop.eup %998  ;;  %v585_v12 = vmul.f32 0.5, %v483_v10 }
  0xf4   : > { %696 = vst [vmem:[%s1528_s6 + $0x28] sm:$0xff] %v664_v9  ;;  %v548_v13 = vpop.f32.mrf.mxu3  ;;  %v647_v15 = vadd.f32 1.0, %v999_v11  ;;  %v462_v17 = vpop.f32.mrf.mxu0 }
  0xf5   : > { %v1001_v14 = vpop.eup %1000  ;;  %v586_v16 = vmul.f32 0.5, %v548_v13  ;;  %1006 = vtanh.f32 %v585_v12  ;;  %v571_v20 = vmul.f32 0.5, %v462_v17 }
  0xf6   : > { %v1003_v18 = vpop.eup %1002  ;;  %v648_v19 = vadd.f32 1.0, %v1001_v14  ;;  %v527_v21 = vpop.f32.mrf.mxu1  ;;  %v679_v23 = vmul.f32 0.5, %v647_v15 }
  0xf7   : > { %v1005_v22 = vpop.eup %1004  ;;  %v633_v24 = vadd.f32 1.0, %v1003_v18  ;;  %1008 = vtanh.f32 %v586_v16  ;;  %v572_v25 = vmul.f32 0.5, %v527_v21 }
  0xf8   : > { %v680_v26 = vmul.f32 0.5, %v648_v19  ;;  %v634_v27 = vadd.f32 1.0, %v1005_v22  ;;  %1010 = vtanh.f32 %v571_v20  ;;  %711 = vst [vmem:[%s1528_s6 + $0xa0] sm:$0xff] %v679_v23 }
  0xf9   : > { %v665_v28 = vmul.f32 0.5, %v633_v24  ;;  %1012 = vtanh.f32 %v572_v25 }
  0xfa   : > { %712 = vst [vmem:[%s1528_s6 + $0xa8] sm:$0xff] %v680_v26  ;;  %v666_v29 = vmul.f32 0.5, %v634_v27  ;;  %v486_v30 = vpop.f32.mrf.mxu2 }
  0xfb   : > { %697 = vst [vmem:[%s1528_s6 + $0x30] sm:$0xff] %v665_v28  ;;  %v1007_v31 = vpop.eup %1006  ;;  %v587_v32 = vmul.f32 0.5, %v486_v30 }
  0xfc   : > { %698 = vst [vmem:[%s1528_s6 + $0x38] sm:$0xff] %v666_v29  ;;  %v551_v33 = vpop.f32.mrf.mxu3  ;;  %v649_v35 = vadd.f32 1.0, %v1007_v31  ;;  %v465_v37 = vpop.f32.mrf.mxu0 }
  0xfd   : > { %v1009_v34 = vpop.eup %1008  ;;  %v588_v36 = vmul.f32 0.5, %v551_v33  ;;  %1014 = vtanh.f32 %v587_v32  ;;  %v573_v40 = vmul.f32 0.5, %v465_v37 }
  0xfe   : > { %v1011_v38 = vpop.eup %1010  ;;  %v650_v39 = vadd.f32 1.0, %v1009_v34  ;;  %v530_v41 = vpop.f32.mrf.mxu1  ;;  %v681_v43 = vmul.f32 0.5, %v649_v35 }
  0xff   : > { %v1013_v42 = vpop.eup %1012  ;;  %v635_v44 = vadd.f32 1.0, %v1011_v38  ;;  %1016 = vtanh.f32 %v588_v36  ;;  %v574_v45 = vmul.f32 0.5, %v530_v41 }
 0x100   : > { %v682_v46 = vmul.f32 0.5, %v650_v39  ;;  %v636_v47 = vadd.f32 1.0, %v1013_v42  ;;  %1018 = vtanh.f32 %v573_v40  ;;  %713 = vst [vmem:[%s1528_s6 + $0xb0] sm:$0xff] %v681_v43 }
 0x101   : > { %v667_v48 = vmul.f32 0.5, %v635_v44  ;;  %1020 = vtanh.f32 %v574_v45 }
 0x102   : > { %714 = vst [vmem:[%s1528_s6 + $0xb8] sm:$0xff] %v682_v46  ;;  %v668_v49 = vmul.f32 0.5, %v636_v47  ;;  %v489_v50 = vpop.f32.mrf.mxu2 }
 0x103   : > { %699 = vst [vmem:[%s1528_s6 + $0x40] sm:$0xff] %v667_v48  ;;  %v1015_v51 = vpop.eup %1014  ;;  %v589_v52 = vmul.f32 0.5, %v489_v50 }
 0x104   : > { %700 = vst [vmem:[%s1528_s6 + $0x48] sm:$0xff] %v668_v49  ;;  %v554_v53 = vpop.f32.mrf.mxu3  ;;  %v651_v55 = vadd.f32 1.0, %v1015_v51  ;;  %v468_v57 = vpop.f32.mrf.mxu0 }
 0x105   : > { %v1017_v54 = vpop.eup %1016  ;;  %v590_v56 = vmul.f32 0.5, %v554_v53  ;;  %1022 = vtanh.f32 %v589_v52  ;;  %v575_v60 = vmul.f32 0.5, %v468_v57 }
 0x106   : > { %v1019_v58 = vpop.eup %1018  ;;  %v652_v59 = vadd.f32 1.0, %v1017_v54  ;;  %v533_v61 = vpop.f32.mrf.mxu1  ;;  %v683_v63 = vmul.f32 0.5, %v651_v55 }
 0x107   : > { %v1021_v62 = vpop.eup %1020  ;;  %v637_v0 = vadd.f32 1.0, %v1019_v58  ;;  %1024 = vtanh.f32 %v590_v56  ;;  %v576_v1 = vmul.f32 0.5, %v533_v61 }
 0x108   : > { %v684_v2 = vmul.f32 0.5, %v652_v59  ;;  %v638_v3 = vadd.f32 1.0, %v1021_v62  ;;  %1026 = vtanh.f32 %v575_v60  ;;  %715 = vst [vmem:[%s1528_s6 + $0xc0] sm:$0xff] %v683_v63 }
 0x109   : > { %v669_v4 = vmul.f32 0.5, %v637_v0  ;;  %1028 = vtanh.f32 %v576_v1 }
 0x10a   : > { %716 = vst [vmem:[%s1528_s6 + $0xc8] sm:$0xff] %v684_v2  ;;  %v670_v5 = vmul.f32 0.5, %v638_v3  ;;  %v492_v6 = vpop.f32.mrf.mxu2 }
 0x10b   : > { %701 = vst [vmem:[%s1528_s6 + $0x50] sm:$0xff] %v669_v4  ;;  %v1023_v7 = vpop.eup %1022  ;;  %v591_v8 = vmul.f32 0.5, %v492_v6 }
 0x10c   : > { %702 = vst [vmem:[%s1528_s6 + $0x58] sm:$0xff] %v670_v5  ;;  %v557_v9 = vpop.f32.mrf.mxu3  ;;  %v653_v11 = vadd.f32 1.0, %v1023_v7  ;;  %v471_v13 = vpop.f32.mrf.mxu0 }
 0x10d   : > { %v1025_v10 = vpop.eup %1024  ;;  %v592_v12 = vmul.f32 0.5, %v557_v9  ;;  %1030 = vtanh.f32 %v591_v8  ;;  %v577_v16 = vmul.f32 0.5, %v471_v13 }
 0x10e   : > { %v1027_v14 = vpop.eup %1026  ;;  %v654_v15 = vadd.f32 1.0, %v1025_v10  ;;  %v536_v17 = vpop.f32.mrf.mxu1  ;;  %v685_v19 = vmul.f32 0.5, %v653_v11 }
 0x10f   : > { %v1029_v18 = vpop.eup %1028  ;;  %v639_v20 = vadd.f32 1.0, %v1027_v14  ;;  %1032 = vtanh.f32 %v592_v12  ;;  %v578_v21 = vmul.f32 0.5, %v536_v17 }
 0x110   : > { %v686_v22 = vmul.f32 0.5, %v654_v15  ;;  %v640_v23 = vadd.f32 1.0, %v1029_v18  ;;  %1034 = vtanh.f32 %v577_v16  ;;  %717 = vst [vmem:[%s1528_s6 + $0xd0] sm:$0xff] %v685_v19 }
 0x111   : > { %v671_v24 = vmul.f32 0.5, %v639_v20  ;;  %1036 = vtanh.f32 %v578_v21 }
 0x112   : > { %718 = vst [vmem:[%s1528_s6 + $0xd8] sm:$0xff] %v686_v22  ;;  %v672_v25 = vmul.f32 0.5, %v640_v23  ;;  %v495_v26 = vpop.f32.mrf.mxu2 }
 0x113   : > { %703 = vst [vmem:[%s1528_s6 + $0x60] sm:$0xff] %v671_v24  ;;  %v1031_v27 = vpop.eup %1030  ;;  %v593_v28 = vmul.f32 0.5, %v495_v26 }
 0x114   : > { %704 = vst [vmem:[%s1528_s6 + $0x68] sm:$0xff] %v672_v25  ;;  %v560_v29 = vpop.f32.mrf.mxu3  ;;  %v655_v31 = vadd.f32 1.0, %v1031_v27 }
 0x115   : > { %v1033_v30 = vpop.eup %1032  ;;  %v594_v32 = vmul.f32 0.5, %v560_v29  ;;  %1038 = vtanh.f32 %v593_v28 }
 0x116   : > { %v1035_v33 = vpop.eup %1034  ;;  %v656_v34 = vadd.f32 1.0, %v1033_v30  ;;  %v687_v36 = vmul.f32 0.5, %v655_v31 }
 0x117   : > { %v1037_v35 = vpop.eup %1036  ;;  %v641_v37 = vadd.f32 1.0, %v1035_v33  ;;  %1040 = vtanh.f32 %v594_v32 }
 0x118   : > { %v688_v38 = vmul.f32 0.5, %v656_v34  ;;  %v642_v39 = vadd.f32 1.0, %v1037_v35  ;;  %719 = vst [vmem:[%s1528_s6 + $0xe0] sm:$0xff] %v687_v36 }
 0x119   : > { %v673_v40 = vmul.f32 0.5, %v641_v37 }
 0x11a   : > { %720 = vst [vmem:[%s1528_s6 + $0xe8] sm:$0xff] %v688_v38  ;;  %v674_v41 = vmul.f32 0.5, %v642_v39 }
 0x11b   : > { %705 = vst [vmem:[%s1528_s6 + $0x70] sm:$0xff] %v673_v40  ;;  %v1039_v42 = vpop.eup %1038 }
 0x11c   : > { %706 = vst [vmem:[%s1528_s6 + $0x78] sm:$0xff] %v674_v41  ;;  %v657_v44 = vadd.f32 1.0, %v1039_v42 }
 0x11d   : > { %v1041_v43 = vpop.eup %1040 }
 0x11e   : > { %v658_v45 = vadd.f32 1.0, %v1041_v43  ;;  %v689_v46 = vmul.f32 0.5, %v657_v44 }
 0x120   : > { %v690_v47 = vmul.f32 0.5, %v658_v45  ;;  %721 = vst [vmem:[%s1528_s6 + $0xf0] sm:$0xff] %v689_v46 }
 0x122   : > { %722 = vst [vmem:[%s1528_s6 + $0xf8] sm:$0xff] %v690_v47 }
 0x123   : > { %1069 = shalt.err (!%p1066_p3)
}
 0x124   : > { %s1122_s30 = smov 256   ;;  %s1123_s4 = smov 16  }
 0x125   : > { %921 = dma.vmem_to_hbm [thread:$0]  (%p1179_p4), %s740_s12, 4096, %s742_s18, %s724_s20, %s1122_s30, %s1122_s30, %s1123_s4  }
 0x126 PF: > { %p927_p5 = scmp.ge.s32.totalorder %s1120_s14, 2  ;;  %s756_s3 = sand.u32 1, %s1100_s9  }
 0x127   : > { %s757_s5 = scalar_lea.sflag [#allocation3], %s756_s3 }
 0x128   : > { %p924_p6 = pnand %p927_p5, %p1186_p8 }
 0x12a   : > { %p925_p7 = pneg %p924_p6 }
 0x12c   : > { %1095 = dma.done.wait (%p925_p7), %s757_s5, 4096  }
 0x12d   : > { %1097 = vsyncadd (%p925_p7), %s757_s5, 4294963200  ;;  %s15_s14 = sadd.s32 1, %s1120_s14   ;;  %s1606_s9 = smov %s1104_s10 }
 0x12e   : > { %p12_p9 = scmp.ge.s32.totalorder %s15_s14, 4   ;;  %s1607_s10 = smov %s1108_s11 }
 0x12f   : > { %s1608_s11 = smov %s1192_s22  ;;  %s1609_s12 = smov %s1116_s13 }
 0x130   : > { %s1610_s13 = smov %s1612_s17  ;;  %14 = sbr.rel (!%p12_p9) target bundleno = 4 (0x4), region = 64 }
 0x135   :  { %763 = vsyncpa [#allocation3], 1 }
 0x136   :  { %765 = vsyncpa [#allocation3 + $0x1], 1 }

</bundles_post_ra>
